<compile_context>
chip_gen: v6e
topology: v6e:2x2x1
jax: 0.10.0
libtpu: 0.0.40
codegen_flags: <defaults>
</compile_context>

<pallas_src>
import functools

import jax
import jax.numpy as jnp
from jax import lax
from jax.experimental import pallas as pl
from jax.experimental.pallas import tpu as pltpu


def _siamese_attn_kernel(*refs, mm_dtype, stacked):
    """One (batch*head, column-tile) grid step.

    refs (stacked=True):  xf, xs, wf=[w1;w3], w2, w4, o, kp_scr, v_scr
    refs (stacked=False): xf, xs, w1, w2, w3, w4,  o, kp_scr, v_scr

    xf/xs : (Cn, S)  inputs, resident across the column axis
    o     : (Cn, tJ) output column tile
    kp_scr: (Cn, S)  key_p  = w1 @ first               (mm_dtype scratch)
    v_scr : (Cn, S)  value  = (w3 @ first)*(w4 @ second) (mm_dtype scratch)
    """
    if stacked:
        (xf_ref, xs_ref, wf_ref, w2_ref, w4_ref, o_ref, kp_ref, v_ref) = refs
    else:
        (xf_ref, xs_ref, w1_ref, w2_ref, w3_ref, w4_ref,
         o_ref, kp_ref, v_ref) = refs

    j = pl.program_id(1)
    Cn = kp_ref.shape[0]
    tJ = o_ref.shape[-1]

    # ---- 1x1 convs for key_p / value: once per batch element ---------------
    @pl.when(j == 0)
    def _():
        if stacked:
            f = jnp.dot(wf_ref[...], xf_ref[...],
                        preferred_element_type=jnp.float32)   # (2Cn, S) = [key_p; v3]
            kp = f[:Cn]
            v3 = f[Cn:]
        else:
            kp = jnp.dot(w1_ref[...], xf_ref[...],
                         preferred_element_type=jnp.float32)
            v3 = jnp.dot(w3_ref[...], xf_ref[...],
                         preferred_element_type=jnp.float32)
        v4 = jnp.dot(w4_ref[...], xs_ref[...],
                     preferred_element_type=jnp.float32)
        kp_ref[...] = kp.astype(kp_ref.dtype)
        v_ref[...] = (v3 * v4).astype(v_ref.dtype)

    # ---- attention for this column tile -------------------------------------
    col0 = pl.multiple_of(j * tJ, tJ)
    # query tile = w2 @ second[:, cols]; tiny (Cn*Cn*tJ MACs) -> no q scratch.
    q_blk = jnp.dot(w2_ref[...], xs_ref[:, pl.ds(col0, tJ)],
                    preferred_element_type=jnp.float32).astype(mm_dtype)

    # attn[i, t] = sum_c key_p[c, i] * query[c, col0 + t]   -> (S, tJ)
    attn = lax.dot_general(
        kp_ref[...], q_blk,
        dimension_numbers=(((0,), (0,)), ((), ())),
        preferred_element_type=jnp.float32)

    # F.softmax(res, dim=1): softmax over the row index i for each column.
    # Columns are independent -> block-local softmax, no carried state.
    m = jnp.max(attn, axis=0, keepdims=True)                  # (1, tJ)
    e = jnp.exp(attn - m)                                     # (S, tJ) f32
    denom = jnp.sum(e, axis=0, keepdims=True)                 # (1, tJ)

    # Deferred, EXACT normalization: divide the (Cn, tJ) result, not the
    # (S, tJ) slab.  (The previous approx reciprocal cost ~1e-2 error.)
    out = jnp.dot(v_ref[...], e.astype(mm_dtype),
                  preferred_element_type=jnp.float32)         # (Cn, tJ)
    o_ref[...] = (out / denom).astype(o_ref.dtype)


def _vmem_capacity_bytes():
    try:
        return int(pltpu.get_tpu_info().vmem_capacity_bytes)
    except Exception:
        return 64 * 1024 * 1024   # conservative: v7x has 64 MiB per TensorCore


def _estimate_vmem_bytes(S, Cn, tJ, in_item, mm_item):
    """Per-grid-step working set, incl. double buffering and j==0 temporaries."""
    return (2 * 2 * Cn * S * in_item        # xf, xs input blocks (double-buffered)
            + 2 * Cn * tJ * in_item         # output blocks (double-buffered)
            + 2 * 4 * 2 * Cn * Cn * 4       # weights (<= 4 arrays, <= (2Cn,Cn))
            + 2 * Cn * S * mm_item          # key_p / value scratch
            + 4 * Cn * S * 4                # j==0 f32 conv intermediates + slack
            + S * tJ * 4                    # attn (f32)
            + S * tJ * mm_item              # e (mm dtype)
            + S * tJ * 4                    # slack for fused elementwise temps
            + 2 * Cn * tJ * 4)              # q tile + un-normalized out (f32)


def _pick_col_tile(S, Cn, in_item, mm_item, vmem_budget, max_col_tile=None):
    """Largest multiple of 128 dividing S whose working set fits the budget."""
    if S % 128 != 0:
        return S                            # block dim == full array dim is legal
    if max_col_tile is not None:
        tj = min(S, max(128, (max_col_tile // 128) * 128))
    else:
        tj = S
    while tj > 128 and (S % tj != 0 or
                        _estimate_vmem_bytes(S, Cn, tj, in_item, mm_item)
                        > vmem_budget):
        tj -= 128
    return tj


def siamese_attention(first, second, w1, w2, w3, w4, head_count=1, *,
                      max_col_tile=None, use_bf16_matmul=True):
    """first, second: (B, C, H, W). w1..w4: (Cn, Cn) bias-free 1x1-conv weights."""
    B, C, H, W = first.shape
    N = head_count
    Cn = C // N
    S = H * W
    BN = B * N

    xf = first.reshape(BN, Cn, S)
    xs = second.reshape(BN, Cn, S)

    mm_dtype = jnp.bfloat16 if use_bf16_matmul else jnp.float32
    in_item = jnp.dtype(first.dtype).itemsize
    mm_item = jnp.dtype(mm_dtype).itemsize

    # Generation-aware budget: never request the whole physical VMEM (v7x has
    # only 64 MiB per TC); keep 20% headroom for compiler-internal scratch.
    vmem_budget = int(0.8 * _vmem_capacity_bytes())
    tJ = _pick_col_tile(S, Cn, in_item, mm_item, vmem_budget, max_col_tile)
    J = S // tJ
    vmem_limit = int(min(
        max(int(1.25 * _estimate_vmem_bytes(S, Cn, tJ, in_item, mm_item)),
            32 * 1024 * 1024),
        vmem_budget))

    # Stack [w1; w3] only when Cn % 8 == 0: otherwise the f[:Cn]/f[Cn:] sublane
    # slices cross (8,128) vreg tiles and force relayouts of (Cn, S) slabs.
    stacked = (Cn % 8 == 0)
    if stacked:
        weights = (jnp.concatenate([w1, w3], axis=0), w2, w4)
        w_specs = [pl.BlockSpec((2 * Cn, Cn), lambda b, j: (0, 0)),
                   pl.BlockSpec((Cn, Cn), lambda b, j: (0, 0)),
                   pl.BlockSpec((Cn, Cn), lambda b, j: (0, 0))]
    else:
        weights = (w1, w2, w3, w4)
        w_specs = [pl.BlockSpec((Cn, Cn), lambda b, j: (0, 0))] * 4

    out = pl.pallas_call(
        functools.partial(_siamese_attn_kernel, mm_dtype=mm_dtype,
                          stacked=stacked),
        out_shape=jax.ShapeDtypeStruct((BN, Cn, S), first.dtype),
        grid_spec=pltpu.PrefetchScalarGridSpec(
            num_scalar_prefetch=0,
            grid=(BN, J),
            in_specs=[
                pl.BlockSpec((pl.Squeezed(), Cn, S), lambda b, j: (b, 0, 0)),
                pl.BlockSpec((pl.Squeezed(), Cn, S), lambda b, j: (b, 0, 0)),
            ] + w_specs,
            out_specs=pl.BlockSpec((pl.Squeezed(), Cn, tJ),
                                   lambda b, j: (b, 0, j)),
            scratch_shapes=[
                pltpu.VMEM((Cn, S), mm_dtype),   # key_p = w1 @ first
                pltpu.VMEM((Cn, S), mm_dtype),   # value = (w3@first)*(w4@second)
            ]),
        compiler_params=pltpu.CompilerParams(
            dimension_semantics=("parallel", "arbitrary"),
            vmem_limit_bytes=vmem_limit),
    )(xf, xs, *weights)

    return out.reshape(B, C, H, W)


def _reference(first, second, w1, w2, w3, w4, head_count=1, mm_dtype=None):
    """Pure-JAX mirror of the PyTorch forward (Precision.HIGHEST -> true f32).

    mm_dtype=None      : exact module math.
    mm_dtype=bfloat16  : mirrors the kernel's cast points (bf16 MXU operands,
                         f32 accumulation) for a tight check of the default path.
    """
    B, C, H, W = first.shape
    N = head_count
    Cn = C // N
    S = H * W
    xf = first.reshape(B * N, Cn, S)
    xs = second.reshape(B * N, Cn, S)
    hi = jax.lax.Precision.HIGHEST

    key_p = jnp.einsum("oc,bcs->bos", w1, xf, precision=hi)
    query = jnp.einsum("oc,bcs->bos", w2, xs, precision=hi)
    value = (jnp.einsum("oc,bcs->bos", w3, xf, precision=hi) *
             jnp.einsum("oc,bcs->bos", w4, xs, precision=hi))
    if mm_dtype is not None:
        key_p = key_p.astype(mm_dtype)
        query = query.astype(mm_dtype)
        value = value.astype(mm_dtype)

    attn = jnp.einsum("bci,bct->bit", key_p, query, precision=hi,
                      preferred_element_type=jnp.float32)        # (BN, S, S)
    m = jnp.max(attn, axis=1, keepdims=True)
    e = jnp.exp(attn - m)
    denom = jnp.sum(e, axis=1, keepdims=True)                    # (BN, 1, S)
    if mm_dtype is not None:
        e = e.astype(mm_dtype)
    out = jnp.einsum("bci,bit->bct", value, e, precision=hi,
                     preferred_element_type=jnp.float32) / denom
    return out.reshape(B, C, H, W).astype(first.dtype)


if __name__ == "__main__":
    key0 = jax.random.PRNGKey(0)
    kf, ks, k1, k2, k3, k4 = jax.random.split(key0, 6)

    # ---- Shapes 1: B=2, C=4, H=W=16, head_count=1 (Cn=4 -> unstacked path) --
    B, C, H, W = 2, 4, 16, 16
    head_count = 1
    Cn = C // head_count
    scale = 1.0 / jnp.sqrt(jnp.float32(Cn))

    first = jax.random.normal(kf, (B, C, H, W), dtype=jnp.float32)
    second = jax.random.normal(ks, (B, C, H, W), dtype=jnp.float32)
    w1 = jax.random.normal(k1, (Cn, Cn), dtype=jnp.float32) * scale
    w2 = jax.random.normal(k2, (Cn, Cn), dtype=jnp.float32) * scale
    w3 = jax.random.normal(k3, (Cn, Cn), dtype=jnp.float32) * scale
    w4 = jax.random.normal(k4, (Cn, Cn), dtype=jnp.float32) * scale

    ref = _reference(first, second, w1, w2, w3, w4, head_count)

    # (a) f32 matmul path, forced tJ=128 (J=2 column tiles): tight check.
    out_f32 = jax.block_until_ready(
        siamese_attention(first, second, w1, w2, w3, w4, head_count,
                          use_bf16_matmul=False, max_col_tile=128))
    assert out_f32.shape == (B, C, H, W)
    err = float(jnp.max(jnp.abs(out_f32 - ref)))
    assert jnp.allclose(out_f32, ref, rtol=5e-3, atol=5e-3), \
        f"f32 path max abs err {err}"

    # (b) default path (bf16 MXU operands, f32 accumulation, auto tile):
    #     checked against a reference mirroring the kernel's cast points.
    out_def = jax.block_until_ready(
        siamese_attention(first, second, w1, w2, w3, w4, head_count))
    ref_bf16 = _reference(first, second, w1, w2, w3, w4, head_count,
                          mm_dtype=jnp.bfloat16)
    err = float(jnp.max(jnp.abs(out_def - ref_bf16)))
    assert jnp.allclose(out_def, ref_bf16, rtol=5e-2, atol=5e-2), \
        f"bf16 path max abs err vs bf16 reference {err}"
    # Sanity vs the exact module math (bf16-level deviation is expected).
    assert jnp.allclose(out_def, ref, rtol=2.5e-1, atol=2.5e-1)

    # ---- Shapes 2: multi-head + stacked-weight path (head_count=2, Cn=8) ----
    B2, C2, H2, W2, hc2 = 2, 16, 8, 16, 2
    Cn2 = C2 // hc2
    k2f, k2s, k21, k22, k23, k24 = jax.random.split(jax.random.PRNGKey(1), 6)
    scale2 = 1.0 / jnp.sqrt(jnp.float32(Cn2))
    first2 = jax.random.normal(k2f, (B2, C2, H2, W2), dtype=jnp.float32)
    second2 = jax.random.normal(k2s, (B2, C2, H2, W2), dtype=jnp.float32)
    v1 = jax.random.normal(k21, (Cn2, Cn2), dtype=jnp.float32) * scale2
    v2 = jax.random.normal(k22, (Cn2, Cn2), dtype=jnp.float32) * scale2
    v3 = jax.random.normal(k23, (Cn2, Cn2), dtype=jnp.float32) * scale2
    v4 = jax.random.normal(k24, (Cn2, Cn2), dtype=jnp.float32) * scale2

    out2 = jax.block_until_ready(
        siamese_attention(first2, second2, v1, v2, v3, v4, hc2))
    ref2 = _reference(first2, second2, v1, v2, v3, v4, hc2,
                      mm_dtype=jnp.bfloat16)
    err = float(jnp.max(jnp.abs(out2 - ref2)))
    assert out2.shape == (B2, C2, H2, W2)
    assert jnp.allclose(out2, ref2, rtol=5e-2, atol=5e-2), \
        f"stacked/multi-head path max abs err vs bf16 reference {err}"

    print("KERNEL_OK")
</pallas_src>

<mosaic_0001>
module attributes {stable_mosaic.version = 11 : i64} {
  func.func @_siamese_attn_kernel(%arg0: i32, %arg1: i32, %arg2: memref<1x4x256xf32, #tpu.memory_space<vmem>>, %arg3: memref<1x4x256xf32, #tpu.memory_space<vmem>>, %arg4: memref<4x4xf32, #tpu.memory_space<vmem>>, %arg5: memref<4x4xf32, #tpu.memory_space<vmem>>, %arg6: memref<4x4xf32, #tpu.memory_space<vmem>>, %arg7: memref<4x4xf32, #tpu.memory_space<vmem>>, %arg8: memref<1x4x128xf32, #tpu.memory_space<vmem>>, %arg9: memref<4x256xf32, #tpu.memory_space<vmem>>, %arg10: memref<4x256xf32, #tpu.memory_space<vmem>>) attributes {dimension_semantics = [#tpu.dimension_semantics<parallel>, #tpu.dimension_semantics<arbitrary>], iteration_bounds = array<i64: 2, 2>, scalar_prefetch = 0 : i64, scratch_operands = 2 : i64, tpu.core_type = #tpu.core_type<tc>, window_params = [{transform_indices = @transform_0, window_bounds = array<i64: 1, 4, 256>}, {transform_indices = @transform_1, window_bounds = array<i64: 1, 4, 256>}, {pipeline_mode = #tpu.pipeline_mode<synchronous>, transform_indices = @transform_2, window_bounds = array<i64: 4, 4>}, {pipeline_mode = #tpu.pipeline_mode<synchronous>, transform_indices = @transform_3, window_bounds = array<i64: 4, 4>}, {pipeline_mode = #tpu.pipeline_mode<synchronous>, transform_indices = @transform_4, window_bounds = array<i64: 4, 4>}, {pipeline_mode = #tpu.pipeline_mode<synchronous>, transform_indices = @transform_5, window_bounds = array<i64: 4, 4>}, {transform_indices = @transform_6, window_bounds = array<i64: 1, 4, 128>}]} {
    %c0_i32 = arith.constant 0 : i32
    %0 = arith.cmpi eq, %arg1, %c0_i32 : i32
    %1 = arith.extui %0 : i1 to i32
    %c0_i32_0 = arith.constant 0 : i32
    %2 = arith.cmpi ne, %1, %c0_i32_0 : i32
    scf.if %2 {
      %c0_15 = arith.constant 0 : index
      %c0_16 = arith.constant 0 : index
      %26 = vector.load %arg4[%c0_15, %c0_16] : memref<4x4xf32, #tpu.memory_space<vmem>>, vector<4x4xf32>
      %c0_17 = arith.constant 0 : index
      %c0_18 = arith.constant 0 : index
      %c0_19 = arith.constant 0 : index
      %27 = vector.load %arg2[%c0_17, %c0_18, %c0_19] : memref<1x4x256xf32, #tpu.memory_space<vmem>>, vector<1x4x256xf32>
      %28 = vector.shape_cast %27 : vector<1x4x256xf32> to vector<4x256xf32>
      %cst_20 = arith.constant dense<0.000000e+00> : vector<4x256xf32>
      %29 = tpu.matmul %26, %28, %cst_20 {dimension_numbers = #tpu.dot_dimension_numbers<[1], [0], [0], [1], [0, 0, 1, 1], [], []>} : vector<4x4xf32>, vector<4x256xf32>, vector<4x256xf32> -> vector<4x256xf32>
      %c0_21 = arith.constant 0 : index
      %c0_22 = arith.constant 0 : index
      %30 = vector.load %arg6[%c0_21, %c0_22] : memref<4x4xf32, #tpu.memory_space<vmem>>, vector<4x4xf32>
      %c0_23 = arith.constant 0 : index
      %c0_24 = arith.constant 0 : index
      %c0_25 = arith.constant 0 : index
      %31 = vector.load %arg2[%c0_23, %c0_24, %c0_25] : memref<1x4x256xf32, #tpu.memory_space<vmem>>, vector<1x4x256xf32>
      %32 = vector.shape_cast %31 : vector<1x4x256xf32> to vector<4x256xf32>
      %cst_26 = arith.constant dense<0.000000e+00> : vector<4x256xf32>
      %33 = tpu.matmul %30, %32, %cst_26 {dimension_numbers = #tpu.dot_dimension_numbers<[1], [0], [0], [1], [0, 0, 1, 1], [], []>} : vector<4x4xf32>, vector<4x256xf32>, vector<4x256xf32> -> vector<4x256xf32>
      %c0_27 = arith.constant 0 : index
      %c0_28 = arith.constant 0 : index
      %34 = vector.load %arg7[%c0_27, %c0_28] : memref<4x4xf32, #tpu.memory_space<vmem>>, vector<4x4xf32>
      %c0_29 = arith.constant 0 : index
      %c0_30 = arith.constant 0 : index
      %c0_31 = arith.constant 0 : index
      %35 = vector.load %arg3[%c0_29, %c0_30, %c0_31] : memref<1x4x256xf32, #tpu.memory_space<vmem>>, vector<1x4x256xf32>
      %36 = vector.shape_cast %35 : vector<1x4x256xf32> to vector<4x256xf32>
      %cst_32 = arith.constant dense<0.000000e+00> : vector<4x256xf32>
      %37 = tpu.matmul %34, %36, %cst_32 {dimension_numbers = #tpu.dot_dimension_numbers<[1], [0], [0], [1], [0, 0, 1, 1], [], []>} : vector<4x4xf32>, vector<4x256xf32>, vector<4x256xf32> -> vector<4x256xf32>
      %c0_33 = arith.constant 0 : index
      %c0_34 = arith.constant 0 : index
      %38 = vector.load %arg9[%c0_33, %c0_34] : memref<4x256xf32, #tpu.memory_space<vmem>>, vector<4x256xf32>
      tpu.vector_store %arg9[%c0_33, %c0_34], %29 {strides = array<i32>} : memref<4x256xf32, #tpu.memory_space<vmem>>, vector<4x256xf32>,
      %39 = arith.mulf %33, %37 : vector<4x256xf32>
      %c0_35 = arith.constant 0 : index
      %c0_36 = arith.constant 0 : index
      %40 = vector.load %arg10[%c0_35, %c0_36] : memref<4x256xf32, #tpu.memory_space<vmem>>, vector<4x256xf32>
      tpu.vector_store %arg10[%c0_35, %c0_36], %39 {strides = array<i32>} : memref<4x256xf32, #tpu.memory_space<vmem>>, vector<4x256xf32>,
    } else {
    }
    %c128_i32 = arith.constant 128 : i32
    %3 = arith.muli %arg1, %c128_i32 : i32
    %4 = tpu.assume_multiple %3, 128 : i32
    %c0 = arith.constant 0 : index
    %c0_1 = arith.constant 0 : index
    %5 = vector.load %arg5[%c0, %c0_1] : memref<4x4xf32, #tpu.memory_space<vmem>>, vector<4x4xf32>
    %c0_2 = arith.constant 0 : index
    %c0_3 = arith.constant 0 : index
    %6 = arith.index_cast %4 : i32 to index
    %7 = vector.load %arg3[%c0_2, %c0_3, %6] : memref<1x4x256xf32, #tpu.memory_space<vmem>>, vector<1x4x128xf32>
    %8 = vector.shape_cast %7 : vector<1x4x128xf32> to vector<4x128xf32>
    %cst = arith.constant dense<0.000000e+00> : vector<4x128xf32>
    %9 = tpu.matmul %5, %8, %cst {dimension_numbers = #tpu.dot_dimension_numbers<[1], [0], [0], [1], [0, 0, 1, 1], [], []>} : vector<4x4xf32>, vector<4x128xf32>, vector<4x128xf32> -> vector<4x128xf32>
    %c0_4 = arith.constant 0 : index
    %c0_5 = arith.constant 0 : index
    %10 = vector.load %arg9[%c0_4, %c0_5] : memref<4x256xf32, #tpu.memory_space<vmem>>, vector<4x256xf32>
    %cst_6 = arith.constant dense<0.000000e+00> : vector<256x128xf32>
    %11 = tpu.matmul %10, %9, %cst_6 {dimension_numbers = #tpu.dot_dimension_numbers<[0], [0], [1], [1], [0, 1, 1, 1], [], []>} : vector<4x256xf32>, vector<4x128xf32>, vector<256x128xf32> -> vector<256x128xf32>
    %cst_7 = arith.constant dense<0xFF800000> : vector<128xf32>
    %12 = vector.multi_reduction <maximumf>, %11, %cst_7 [0] : vector<256x128xf32> to vector<128xf32>
    %13 = vector.shape_cast %12 : vector<128xf32> to vector<1x128xf32>
    %14 = vector.broadcast %13 : vector<1x128xf32> to vector<256x128xf32>
    %15 = arith.subf %11, %14 : vector<256x128xf32>
    %16 = math.exp %15 : vector<256x128xf32>
    %cst_8 = arith.constant dense<0.000000e+00> : vector<128xf32>
    %17 = vector.multi_reduction <add>, %16, %cst_8 [0] : vector<256x128xf32> to vector<128xf32>
    %18 = vector.shape_cast %17 : vector<128xf32> to vector<1x128xf32>
    %c0_9 = arith.constant 0 : index
    %c0_10 = arith.constant 0 : index
    %19 = vector.load %arg10[%c0_9, %c0_10] : memref<4x256xf32, #tpu.memory_space<vmem>>, vector<4x256xf32>
    %cst_11 = arith.constant dense<0.000000e+00> : vector<4x128xf32>
    %20 = tpu.matmul %19, %16, %cst_11 {dimension_numbers = #tpu.dot_dimension_numbers<[1], [0], [0], [1], [0, 0, 1, 1], [], []>} : vector<4x256xf32>, vector<256x128xf32>, vector<4x128xf32> -> vector<4x128xf32>
    %21 = vector.broadcast %18 : vector<1x128xf32> to vector<4x128xf32>
    %22 = arith.divf %20, %21 : vector<4x128xf32>
    %c0_12 = arith.constant 0 : index
    %c0_13 = arith.constant 0 : index
    %c0_14 = arith.constant 0 : index
    %23 = vector.load %arg8[%c0_12, %c0_13, %c0_14] : memref<1x4x128xf32, #tpu.memory_space<vmem>>, vector<1x4x128xf32>
    %24 = vector.shape_cast %23 : vector<1x4x128xf32> to vector<4x128xf32>
    %25 = vector.shape_cast %22 : vector<4x128xf32> to vector<1x4x128xf32>
    tpu.vector_store %arg8[%c0_12, %c0_13, %c0_14], %25 {strides = array<i32>} : memref<1x4x128xf32, #tpu.memory_space<vmem>>, vector<1x4x128xf32>,
    return
  }
  func.func @transform_0(%arg0: i32, %arg1: i32) -> (i32, i32, i32) {
    %c0_i32 = arith.constant 0 : i32
    %c0_i32_0 = arith.constant 0 : i32
    %c0_i32_1 = arith.constant 0 : i32
    return %arg0, %c0_i32, %c0_i32_0 : i32, i32, i32
  }
  func.func @transform_1(%arg0: i32, %arg1: i32) -> (i32, i32, i32) {
    %c0_i32 = arith.constant 0 : i32
    %c0_i32_0 = arith.constant 0 : i32
    %c0_i32_1 = arith.constant 0 : i32
    return %arg0, %c0_i32, %c0_i32_0 : i32, i32, i32
  }
  func.func @transform_2(%arg0: i32, %arg1: i32) -> (i32, i32) {
    %c0_i32 = arith.constant 0 : i32
    %c0_i32_0 = arith.constant 0 : i32
    %c0_i32_1 = arith.constant 0 : i32
    return %c0_i32, %c0_i32_0 : i32, i32
  }
  func.func @transform_3(%arg0: i32, %arg1: i32) -> (i32, i32) {
    %c0_i32 = arith.constant 0 : i32
    %c0_i32_0 = arith.constant 0 : i32
    %c0_i32_1 = arith.constant 0 : i32
    return %c0_i32, %c0_i32_0 : i32, i32
  }
  func.func @transform_4(%arg0: i32, %arg1: i32) -> (i32, i32) {
    %c0_i32 = arith.constant 0 : i32
    %c0_i32_0 = arith.constant 0 : i32
    %c0_i32_1 = arith.constant 0 : i32
    return %c0_i32, %c0_i32_0 : i32, i32
  }
  func.func @transform_5(%arg0: i32, %arg1: i32) -> (i32, i32) {
    %c0_i32 = arith.constant 0 : i32
    %c0_i32_0 = arith.constant 0 : i32
    %c0_i32_1 = arith.constant 0 : i32
    return %c0_i32, %c0_i32_0 : i32, i32
  }
  func.func @transform_6(%arg0: i32, %arg1: i32) -> (i32, i32, i32) {
    %c0_i32 = arith.constant 0 : i32
    %c0_i32_0 = arith.constant 0 : i32
    return %arg0, %c0_i32, %arg1 : i32, i32, i32
  }
}

</mosaic_0001>

<bundles_post_ra>
// kernel: tpu_custom_call.1
= control target key start
LH: loop header
LB: loop body
LE: loop exit
PB: predicated region body
PF: predicated region fallthrough
CT: control target
= control target key end

     0   :  { %s2686_s0 = inlined_call_operand.hbm [shape: f32[2,4,256], index: 0, kind: input, shape index: {}]   ;;  %s2687_s1 = inlined_call_operand.hbm [shape: f32[2,4,256], index: 1, kind: input, shape index: {}]   ;;  %s2688_s2 = inlined_call_operand.hbm [shape: f32[4,4], index: 2, kind: input, shape index: {}]   ;;  %s2689_s3 = inlined_call_operand.vmem [shape: f32[4,4], index: 3, kind: input, shape index: {}]   ;;  %s2690_s4 = inlined_call_operand.hbm [shape: f32[4,4], index: 4, kind: input, shape index: {}]   ;;  %s2691_s5 = inlined_call_operand.vmem [shape: f32[4,4], index: 5, kind: input, shape index: {}]   ;;  %s2692_s6 = inlined_call_operand.hbm [shape: f32[2,4,256], index: 6, kind: output, shape index: {}]  }
   0x1   :  { %2704 = sst [smem:[#allocation24_spill]] %s2688_s2 }
   0x2   :  { %2705 = sst [smem:[#allocation25_spill]] %s2689_s3 }
   0x3   :  { %2706 = sst [smem:[#allocation26_spill]] %s2690_s4 }
   0x4   :  { %2707 = sst [smem:[#allocation27_spill]] %s2692_s6 }
   0x5   :  { %11 = vsyncpa [#allocation5], 0 }
   0x6   :  { %13 = vsyncpa [#allocation5 + $0x1], 0 }
   0x7   :  { %14 = vsyncpa [#allocation8], 0 }
   0x8   :  { %16 = vsyncpa [#allocation8 + $0x1], 0 }
   0x9   :  { %17 = vsyncpa [#allocation11], 0 }
   0xa   :  { %18 = vsyncpa [#allocation6], 0 }
   0xb   :  { %20 = vsyncpa [#allocation6 + $0x1], 0  ;;  %s2152_s21 = smov 0   ;;  %s2154_s22 = smov 0  }
   0xc   :  { %s2156_s23 = smov 0   ;;  %s2158_s24 = smov 0  }
   0xd   :  { %s2160_s25 = smov 0   ;;  %s2162_s26 = smov 0  }
   0xe   :  { %s2164_s27 = smov 0   ;;  %s2166_s28 = smov 0  }
   0xf   :  { %s2168_s29 = smov 0   ;;  %s2170_s30 = smov 0  }
  0x10   :  { %s2172_s7 = smov 0  }
  0x11 LB: > { %2708 = sst [smem:[#allocation18_spill]] %s2067_s21  ;;  %s2206_s8 = sadd.s32 4294967295, %s2107_s7   ;;  %s2107_s7 = sphi %s2172_s7, %s26_s7   ;;  %s2103_s30 = sphi %s2170_s30, %s2749_s30   ;;  %s2099_s29 = sphi %s2168_s29, %s2748_s29   ;;  %s2095_s28 = sphi %s2166_s28, %s2747_s28   ;;  %s2091_s27 = sphi %s2164_s27, %s2738_s27   ;;  %s2087_s26 = sphi %s2162_s26, %s2746_s26   ;;  %s2083_s25 = sphi %s2160_s25, %s2745_s25   ;;  %s2079_s24 = sphi %s2158_s24, %s2744_s24   ;;  %s2075_s23 = sphi %s2156_s23, %s2743_s23   ;;  %s2071_s22 = sphi %s2154_s22, %s2742_s22   ;;  %s2067_s21 = sphi %s2152_s21, %s2741_s21  }
  0x12   : > { %2709 = sst [smem:[#allocation19_spill]] %s2095_s28  ;;  %s1470_s9 = sadd.s32 4294967294, %s2107_s7  }
  0x13   : > { %2710 = sst [smem:[#allocation20_spill]] %s2099_s29  ;;  %p58_p0 = scmp.ne.s32.totalorder %s2083_s25, %s2079_s24 }
  0x14   : > { %p2693_p1 = scmp.eq.s32.totalorder %s2206_s8, 0  ;;  %p193_p2 = scmp.ne.s32.totalorder %s2075_s23, %s2071_s22 }
  0x15   : > { %p194_p4 = scmp.eq.s32.totalorder %s2206_s8, 3  ;;  %p199_p5 = scmp.ne.s32.totalorder %s2071_s22, %s2067_s21 }
  0x16   : > { %p2216_p3 = por %p2693_p1, %p58_p0  ;;  %p200_p6 = scmp.eq.s32.totalorder %s1470_s9, 3 }
  0x17   : > { %p2223_p7 = por %p194_p4, %p193_p2  ;;  %p1471_p8 = scmp.ge.s32.totalorder %s2107_s7, 1 }
  0x18   : > { %s2711_s11 = scalar_select %p2216_p3, 1, 0 }
  0x19   : > { %s2712_s12 = scalar_select %p2223_p7, 1, 0 }
  0x1a   : > { %p2228_p9 = por %p200_p6, %p199_p5  ;;  %p207_p10 = scmp.lt.s32.totalorder %s2107_s7, 5 }
  0x1b   : > { %2713 = sst [smem:[#allocation21_spill]] %s2712_s12  ;;  %s2109_s15 = smov [#allocation9]  }
  0x1c   : > { %s2714_s13 = scalar_select %p2228_p9, 1, 0 }
  0x1d   : > { %p2233_p11 = pnand %p1471_p8, %p207_p10  ;;  %s220_s16 = sshll.u32 %s2109_s15, 4  ;;  %s221_s16 = int_to_ptr.vmem [resolvable:$true] %s220_s16 }
  0x1e   : > { %2715 = sst [smem:[#allocation22_spill]] %s2714_s13  ;;  %s2110_s17 = smov [#allocation10]  }
  0x1f   : > { %s2716_s14 = scalar_select %p2233_p11, 1, 0 }
  0x20   : > { %p1680_p12 = pneg %p2233_p11  ;;  %s234_s18 = sshll.u32 %s2110_s17, 4  ;;  %s235_s18 = int_to_ptr.vmem [resolvable:$true] %s234_s18 }
  0x21   : > { %s1878_s20 = scalar_lea.vmem %s221_s16, 64  ;;  %p1886_p6 = scmp.lt.s32.totalorder %s221_s16, %s221_s16 }
  0x22   : > { %p2241_p13 = pnand %p1680_p12, %p2693_p1  ;;  %p1879_p2 = scmp.ne.s32.totalorder %s221_s16, %s1878_s20 }
  0x23   : > { %p1887_p8 = scmp.lt.s32.totalorder %s1878_s20, %s1878_s20 }
  0x24   : > { %p1869_p0 = pneg %p2241_p13 }
  0x25   : > { %p1888_p10 = por %p1887_p8, %p1886_p6 }
  0x26   : > { %p1881_p4 = pnand %p1879_p2, %p1869_p0 }
  0x28   : > { %p1882_p5 = pneg %p1881_p4 }
  0x2a   : > { %p1889_p9 = pnand %p1888_p10, %p1882_p5 }
  0x2c   : > { %1892 = shalt.err (!%p1889_p9)
}
  0x2d   : > { %s2718_s2 = sld [smem:[#allocation24_spill]]  ;;  %s1904_s15 = scalar_lea.vmem %s235_s18, 64 }
  0x2e   : > { %p1905_p12 = scmp.ne.s32.totalorder %s235_s18, %s1904_s15  ;;  %p1912_p2 = scmp.lt.s32.totalorder %s235_s18, %s235_s18 }
  0x2f   : > { %p1913_p4 = scmp.lt.s32.totalorder %s1904_s15, %s1904_s15 }
  0x30   : > { %p1907_p1 = pnand %p1905_p12, %p1869_p0 }
  0x31   : > { %p1914_p3 = por %p1913_p4, %p1912_p2 }
  0x32   : > { %p1908_p7 = pneg %p1907_p1 }
  0x33   : > { %1683 = dma.hbm_to_vmem [thread:$0]  (!%p2241_p13), %s2718_s2, 64, %s221_s16, [#allocation8]  }
  0x34   : > { %p1915_p11 = pnand %p1914_p3, %p1908_p7 }
  0x36   : > { %1918 = shalt.err (!%p1915_p11)
}
  0x37   : > { %s2719_s4 = sld [smem:[#allocation26_spill]]  ;;  %s35_s16 = sadd.s32 1, %s2099_s29 }
  0x38   : > { %s38_s24 = sadd.s32 1, %s2103_s30  ;;  %p36_p1 = scmp.ge.s32.totalorder %s35_s16, 2 }
  0x39   : > { %s45_s19 = sadd.s32 1, %s2087_s26  ;;  %p52_p3 = scmp.ne.s32.totalorder %s2087_s26, %s2083_s25 }
  0x3a   : > { %p53_p7 = scmp.eq.s32.totalorder %s2107_s7, 0  ;;  %s2751_s16 = smov (%p36_p1, %s35_s16), 0 }
  0x3b   : > { %2720 = sst [smem:[#allocation23_spill]] %s2751_s16  ;;  %s2753_s24 = smov (!%p36_p1, %s38_s24), %s2103_s30 }
  0x3c   : > { %p2272_p9 = por %p53_p7, %p52_p3  ;;  %s179_s15 = ssub.s32 %s2099_s29, %s2751_s16 }
  0x3d   : > { %1686 = dma.hbm_to_vmem [thread:$0]  (!%p2241_p13), %s2719_s4, 64, %s235_s18, [#allocation11]  }
  0x3e   : > { %p40_p11 = scmp.ge.s32.totalorder %s2753_s24, 2  ;;  %p1700_p13 = scmp.lt.s32.totalorder %s2107_s7, 4 }
  0x3f   : > { %s248_s18 = sand.u32 1, %s2087_s26   ;;  %s1539_s17 = sshll.u32 %s2103_s30, 7 }
  0x40   : > { %s2755_s24 = smov (%p40_p11, %s2753_s24), 0  ;;  %s2283_s20 = sshll.u32 %s248_s18, 3 }
  0x41   : > { %s42_s10 = ssub.s32 %s2103_s30, %s2755_s24  ;;  %s258_s16 = scalar_lea.hbm %s2686_s0, %s1539_s17 }
  0x42   : > { %p43_p0 = scmp.eq.s32.totalorder %s42_s10, 0  ;;  %s180_s2 = sor.u32 %s179_s15, %s42_s10 }
  0x43   : > { %p181_p5 = scmp.eq.s32.totalorder %s180_s2, 0  ;;  %s2722_s21 = sadd.s32 1, %s2075_s23 }
  0x44   : > { %s2291_s29 = scalar_select %p43_p0, %s2087_s26, %s45_s19  }
  0x45   : > { %s2296_s6 = scalar_select %p181_p5, %s2075_s23, %s2722_s21  }
  0x46   : > { %s252_s12 = scalar_lea.vmem [#allocation4], %s2283_s20  ;;  %p2303_p6 = pnand %p1700_p13, %p2272_p9 }
  0x47   : > { %s260_s28 = sshll.u32 %s252_s12, 4  ;;  %s2310_s4 = scalar_lea.hbm %s2687_s1, %s1539_s17  ;;  %s261_s28 = int_to_ptr.vmem [resolvable:$true] %s260_s28 }
  0x48   : > { %s249_s13 = scalar_lea.sflag [#allocation5], %s248_s18  ;;  %p1921_p8 = pneg %p2303_p6 }
  0x49   : > { %s1932_s21 = scalar_lea.vmem %s261_s28, 128  ;;  %s2111_s12 = smov [#allocation4]  }
  0x4a   : > { %p1933_p10 = scmp.ne.s32.totalorder %s261_s28, %s1932_s21  ;;  %s1937_s19 = sshll.u32 %s2111_s12, 4  ;;  %s1938_s19 = int_to_ptr.vmem [resolvable:$false] %s1937_s19 }
  0x4b   : > { %s1939_s9 = scalar_lea.vmem %s1938_s19, 256  ;;  %p1940_p4 = scmp.lt.s32.totalorder %s261_s28, %s1938_s19 }
  0x4c   : > { %p1935_p12 = pnand %p1933_p10, %p1921_p8  ;;  %p1941_p1 = scmp.lt.s32.totalorder %s1939_s9, %s1932_s21 }
  0x4e   : > { %p1936_p2 = pneg %p1935_p12  ;;  %p1942_p3 = por %p1941_p1, %p1940_p4 }
  0x50   : > { %p1943_p7 = pnand %p1942_p3, %p1936_p2 }
  0x52   : > { %1946 = shalt.err (!%p1943_p7)
}
  0x53   : > { %1690 = dma.hbm_to_vmem [thread:$0]  (!%p2303_p6), %s258_s16, 128, %s261_s28, %s249_s13  }
  0x54   : > { %s267_s15 = sand.u32 1, %s2107_s7   ;;  %s271_s18 = scalar_lea.vmem [#allocation7], %s2283_s20 }
  0x55   : > { %s279_s17 = sshll.u32 %s271_s18, 4  ;;  %s268_s2 = scalar_lea.sflag [#allocation8], %s267_s15  ;;  %s280_s17 = int_to_ptr.vmem [resolvable:$true] %s279_s17 }
  0x56   : > { %s1960_s10 = scalar_lea.vmem %s280_s17, 128  ;;  %s2112_s21 = smov [#allocation7]  }
  0x57   : > { %p1961_p9 = scmp.ne.s32.totalorder %s280_s17, %s1960_s10  ;;  %s1965_s12 = sshll.u32 %s2112_s21, 4  ;;  %s1966_s12 = int_to_ptr.vmem [resolvable:$false] %s1965_s12 }
  0x58   : > { %s1967_s19 = scalar_lea.vmem %s1966_s12, 256  ;;  %p1968_p0 = scmp.lt.s32.totalorder %s280_s17, %s1966_s12 }
  0x59   : > { %p1963_p11 = pnand %p1961_p9, %p1921_p8  ;;  %p1969_p5 = scmp.lt.s32.totalorder %s1967_s19, %s1960_s10 }
  0x5b   : > { %p1964_p13 = pneg %p1963_p11  ;;  %p1970_p10 = por %p1969_p5, %p1968_p0 }
  0x5d   : > { %p1971_p12 = pnand %p1970_p10, %p1964_p13 }
  0x5f   : > { %1974 = shalt.err (!%p1971_p12)
}
  0x60   : > { %1693 = dma.hbm_to_vmem [thread:$0]  (!%p2303_p6), %s2310_s4, 128, %s280_s17, %s268_s2  }
  0x61   : > { %p2724_p2 = scmp.ne.s32.totalorder %s2716_s14, 0 }
  0x62   : > { %s290_s28 = sand.u32 (!%p2724_p2), 1, %s2083_s25   ;;  %p2725_p8 = scmp.ne.s32.totalorder (!%p2724_p2), %s2711_s11, 0 }
  0x63   : > { %288 = sbr.rel (%p2724_p2) target bundleno = 1085 (0x43d), region = 44  ;;  %s2330_s16 = sshll.u32 (!%p2724_p2), %s290_s28, 3 }
  0x64   : > { %s291_s20 = scalar_lea.sflag (!%p2724_p2), [#allocation5], %s290_s28  ;;  %s294_s13 = scalar_lea.vmem (!%p2724_p2), [#allocation4], %s2330_s16 }
  0x68   : > { %2046 = dma.done.wait (%p2725_p8), %s291_s20, 128  }
  0x69   : > { %2048 = vsyncadd (%p2725_p8), %s291_s20, 4294967168  ;;  %s299_s3 = sand.u32 1, %s2206_s8   ;;  %s303_s14 = scalar_lea.vmem [#allocation7], %s2330_s16 }
  0x6a   : > { %s300_s4 = scalar_lea.sflag [#allocation8], %s299_s3 }
  0x6b   : > { %2050 = dma.done.wait (%p2725_p8), %s300_s4, 128  }
  0x6c   : > { %2052 = vsyncadd (%p2725_p8), %s300_s4, 4294967168  ;;  %p2726_p6 = scmp.eq.s32.totalorder %s2206_s8, 0 }
  0x6e   : > { %2054 = dma.done.wait (%p2726_p6), [#allocation8], 64   ;;  %p2727_p4 = pmov %p2726_p6 }
  0x70   : > { %2056 = vsyncadd (%p2727_p4), [#allocation8], 4294967232  ;;  %p2728_p1 = pmov %p2727_p4 }
  0x72   : > { %2058 = dma.done.wait (%p2728_p1), [#allocation11], 64   ;;  %p2729_p3 = pmov %p2728_p1 }
  0x73   : > { %s342_s9 = sand.u32 1, %s2071_s22   ;;  %p1487_p7 = scmp.ne.s32.totalorder %s2091_s27, 0 }
  0x74   : > { %2060 = vsyncadd (%p2729_p3), [#allocation11], 4294967232  ;;  %s2354_s15 = sshll.u32 %s342_s9, 2 }
  0x75   : > { %s344_s11 = scalar_lea.vmem [#allocation12], %s2354_s15  ;;  %348 = sbr.rel (%p1487_p7) target bundleno = 331 (0x14b), region = 64 }
  0x7a   : > { %v350_v0 = vld [vmem:[%s294_s13] sm:$0xff]  ;;  %vm357_vm0 = vcmask 1043456   ;;  %v2113_v2 = vmov 0.0   ;;  %v509_v3 = vld [vmem:[%s303_s14] sm:$0xff]  ;;  %vm353_vm1 = vcmask 31744  }
  0x7b   : > { %v352_v1 = vcombine.high %v350_v0, %v350_v0  ;;  %426 = vmatprep.mubr.f32.mxu0 %v2113_v2  ;;  %501 = vmatprep.mubr.f32.mxu1 %v2113_v2  ;;  %v349_v4 = vld [vmem:[#allocation9] sm:$0xf]  ;;  %v511_v5 = vcombine.high %v509_v3, %v509_v3  ;;  %v433_v6 = vld [vmem:[#allocation10] sm:$0xf]  ;;  %v508_v7 = vld [vmem:[%s2691_s5] sm:$0xf] }
  0x7d   : > { %1488 = vmatprep.subr.msk.mxu0 %vm357_vm0, %v352_v1  ;;  %1491 = vmatprep.subr.msk.mxu1 %vm357_vm0, %v352_v1 }
  0x7e   : > { %1489 = vmatpush1.msk.msra.mxu0 %vm357_vm0, %v350_v0  ;;  %1492 = vmatpush1.msk.msra.mxu1 %vm357_vm0, %v350_v0 }
  0x7f   : > { %1490 = vmatmul.mubr.msk.f32.vlgmr.msra.gmra.mxu0 %vm353_vm1, %v349_v4  ;;  %1494 = vmatprep.subr.msk.mxu0 %vm357_vm0, %v511_v5 }
  0x80   : > { %1495 = vmatpush1.msk.msra.mxu0 %vm357_vm0, %v509_v3  ;;  %1493 = vmatmul.mubr.msk.f32.vlgmr.msra.gmra.mxu1 %vm353_vm1, %v433_v6 }
  0x81   : > { %583 = vmatprep.mubr.f32.mxu0 %v2113_v2 }
  0x83   : > { %1496 = vmatmul.mubr.msk.f32.vlgmr.msra.gmra.mxu0 %vm353_vm1, %v508_v7 }
 0x13f   : > { %v428_v8 = vpop.f32.mrf.mxu0 }
 0x140   : > { %v503_v10 = vpop.f32.mrf.mxu1 }
 0x141   : > { %v430_v9 = vpop.f32.mrf.mxu0 }
 0x142   : > { %v592_v11 = vcombine.low %v428_v8, %v430_v9  ;;  %v505_v13 = vpop.f32.mrf.mxu1 }
 0x143   : > { %v585_v12 = vpop.f32.mrf.mxu0 }
 0x144   : > { %594 = vst [vmem:[#allocation2] sm:$0xff] %v592_v11  ;;  %v595_v15 = vmul.f32 %v585_v12, %v503_v10 }
 0x145   : > { %v587_v14 = vpop.f32.mrf.mxu0 }
 0x146   : > { %v596_v16 = vmul.f32 %v587_v14, %v505_v13 }
 0x148   : > { %v599_v17 = vcombine.low %v595_v15, %v596_v16 }
 0x14a   : > { %601 = vst [vmem:[#allocation3] sm:$0xff] %v599_v17 }
 0x14b PF: > { %s1497_s17 = sshll.u32 %s2091_s27, 7  ;;  %v2114_v18 = vmov 0.0   ;;  %vm2115_vm2 = vmmov 0   ;;  %v687_v19 = vld [vmem:[#allocation2] sm:$0xff]  ;;  %vm613_vm3 = vcmask 1043456   ;;  %s2730_s28 = sld [smem:[#allocation25_spill]] }
 0x14c   : > { %1611 = vmatprep.subr.mxu0 %v2114_v18  ;;  %s604_s2 = sshra.s32 %s1497_s17, 7  ;;  %1613 = vmatprep.mubr.msk.f32.mxu0 %vm2115_vm2, %v2114_v18  ;;  %vm609_vm4 = vcmask 31744   ;;  %v689_v22 = vcombine.high %v687_v19, %v687_v19  ;;  %s2731_s16 = sld [smem:[#allocation19_spill]] }
 0x14d   : > { %s1498_s10 = sshll.u32 %s604_s2, 2  ;;  %691 = vxpose.xlu0.b32.start.end [1/1] (short) %v687_v19, 128  ;;  %s2732_s20 = sld [smem:[#allocation21_spill]] }
 0x14e   : > { %s607_s21 = scalar_lea.vmem %s303_s14, %s1498_s10 [#allocation7]  ;;  %s1342_s14 = sshll.u32 %s344_s11, 4  ;;  %s1343_s14 = int_to_ptr.vmem [resolvable:$true] %s1342_s14 }
 0x14f   : > { %v608_v21 = vld [vmem:[%s607_s21] sm:$0xf]  ;;  %s2733_s17 = sld [smem:[#allocation27_spill]]  ;;  %s1327_s10 = scalar_lea.sflag [#allocation6], %s342_s9 }
 0x150   : > { %1612 = vmatpush3.msk.msra.mxu0 %vm613_vm3, %v608_v21  ;;  %s1975_s21 = scalar_lea.vmem %s1343_s14, 64 }
 0x151   : > { %v603_v20 = vld [vmem:[%s2730_s28] sm:$0xf]  ;;  %v2449_v12 = vld [vmem:[#allocation3] sm:$0xff]  ;;  %p1976_p9 = scmp.ne.s32.totalorder %s1343_s14, %s1975_s21 }
 0x152   : > { %1614 = vmatmul.mubr.msk.f32.vlgmr.msra.gmra.mxu0 %vm609_vm4, %v603_v20  ;;  %v1251_v13 = vcombine.high %v2449_v12, %v2449_v12  ;;  %s1535_s13 = sshll.u32 %s2731_s16, 1 }
 0x153   : > { %s1338_s3 = sadd.s32 %s2091_s27, %s1535_s13  ;;  %p2734_p11 = scmp.ne.s32.totalorder %s2732_s20, 0 }
 0x154   : > { %1317 = vmatprep.mubr.f32.mxu0 %v1251_v13  ;;  %s1536_s4 = sshll.u32 %s1338_s3, 6  ;;  %s2116_s27 = smov [#allocation12]  }
 0x155   : > { %s1340_s2 = scalar_lea.hbm %s2733_s17, %s1536_s4  ;;  %p1977_p13 = pnand %p1976_p9, %p2734_p11 }
 0x156   : > { %s1979_s12 = sshll.u32 %s2116_s27, 4  ;;  %s1980_s12 = int_to_ptr.vmem [resolvable:$false] %s1979_s12 }
 0x157   : > { %p1978_p0 = pneg %p1977_p13  ;;  %s1981_s19 = scalar_lea.vmem %s1980_s12, 128 }
 0x158   : > { %p1982_p5 = scmp.lt.s32.totalorder %s1343_s14, %s1980_s12  ;;  %p1983_p10 = scmp.lt.s32.totalorder %s1981_s19, %s1975_s21 }
 0x15a   : > { %p1984_p12 = por %p1983_p10, %p1982_p5 }
 0x15c   : > { %p1985_p2 = pnand %p1984_p12, %p1978_p0 }
 0x18a   : > { %723 = vxpose.xlu0.b32.start.end [1/1] (short) %v689_v22, 128 }
 0x1c9   : > { %v707_v23 = vpop.trf.xlu0 }
 0x1ca   : > { %1618 = vmatprep.mubr.msk.f32.mxu1 %vm609_vm4, %v707_v23 }
 0x1cd   : > { %v708_v24 = vpop.trf.xlu0 }
 0x1d1   : > { %v709_v25 = vpop.trf.xlu0 }
 0x1d5   : > { %v710_v26 = vpop.trf.xlu0 }
 0x1d9   : > { %v711_v27 = vpop.trf.xlu0 }
 0x1dd   : > { %v712_v28 = vpop.trf.xlu0 }
 0x1e1   : > { %v713_v29 = vpop.trf.xlu0 }
 0x1e5   : > { %v714_v30 = vpop.trf.xlu0 }
 0x1e9   : > { %v715_v31 = vpop.trf.xlu0 }
 0x1ed   : > { %v716_v32 = vpop.trf.xlu0 }
 0x1f1   : > { %v717_v33 = vpop.trf.xlu0 }
 0x1f5   : > { %v718_v34 = vpop.trf.xlu0 }
 0x1f9   : > { %v719_v35 = vpop.trf.xlu0 }
 0x1fd   : > { %v720_v36 = vpop.trf.xlu0 }
 0x201   : > { %v721_v37 = vpop.trf.xlu0 }
 0x205   : > { %v722_v38 = vpop.trf.xlu0 }
 0x209   : > { %v739_v39 = vpop.trf.xlu0 }
 0x20d   : > { %v740_v40 = vpop.trf.xlu0 }
 0x211   : > { %v741_v42 = vpop.trf.xlu0 }
 0x212   : > { %v683_v41 = vpop.f32.mrf.mxu0 }
 0x213   : > { %1616 = vmatprep.subr.msk.mxu1 %vm613_vm3, %v683_v41 }
 0x214   : > { %v1615_v43 = vpop.f32.mrf.mxu0  ;;  %1617 = vmatpush3.msk.msra.mxu1 %vm613_vm3, %v683_v41 }
 0x215   : > { %1619 = vmatmul.mubr.msk.f32.vlgmr.msra.gmra.mxu1 %vm609_vm4, %v708_v24  ;;  %v742_v44 = vpop.trf.xlu0 }
 0x216   : > { %1621 = vmatprep.mubr.msk.f32.mxu1 %vm609_vm4, %v709_v25 }
 0x219   : > { %1622 = vmatmul.mubr.msk.f32.gmra.mxu1 %vm609_vm4, %v710_v26  ;;  %v743_v45 = vpop.trf.xlu0 }
 0x21a   : > { %1624 = vmatprep.mubr.msk.f32.mxu1 %vm609_vm4, %v711_v27 }
 0x21d   : > { %1625 = vmatmul.mubr.msk.f32.gmra.mxu1 %vm609_vm4, %v712_v28  ;;  %v744_v46 = vpop.trf.xlu0 }
 0x21e   : > { %1627 = vmatprep.mubr.msk.f32.mxu1 %vm609_vm4, %v713_v29 }
 0x221   : > { %1628 = vmatmul.mubr.msk.f32.gmra.mxu1 %vm609_vm4, %v714_v30  ;;  %v745_v47 = vpop.trf.xlu0 }
 0x222   : > { %1630 = vmatprep.mubr.msk.f32.mxu1 %vm609_vm4, %v715_v31 }
 0x225   : > { %1631 = vmatmul.mubr.msk.f32.gmra.mxu1 %vm609_vm4, %v716_v32  ;;  %v746_v48 = vpop.trf.xlu0 }
 0x226   : > { %1633 = vmatprep.mubr.msk.f32.mxu1 %vm609_vm4, %v717_v33 }
 0x229   : > { %1634 = vmatmul.mubr.msk.f32.gmra.mxu1 %vm609_vm4, %v718_v34  ;;  %v747_v49 = vpop.trf.xlu0 }
 0x22a   : > { %1636 = vmatprep.mubr.msk.f32.mxu1 %vm609_vm4, %v719_v35 }
 0x22d   : > { %1637 = vmatmul.mubr.msk.f32.gmra.mxu1 %vm609_vm4, %v720_v36  ;;  %v748_v50 = vpop.trf.xlu0 }
 0x22e   : > { %1639 = vmatprep.mubr.msk.f32.mxu1 %vm609_vm4, %v721_v37 }
 0x231   : > { %1640 = vmatmul.mubr.msk.f32.gmra.mxu1 %vm609_vm4, %v722_v38  ;;  %v749_v51 = vpop.trf.xlu0 }
 0x232   : > { %1642 = vmatprep.mubr.msk.f32.mxu1 %vm609_vm4, %v739_v39 }
 0x235   : > { %1643 = vmatmul.mubr.msk.f32.gmra.mxu1 %vm609_vm4, %v740_v40  ;;  %v750_v52 = vpop.trf.xlu0 }
 0x236   : > { %1645 = vmatprep.mubr.msk.f32.mxu1 %vm609_vm4, %v741_v42 }
 0x239   : > { %1646 = vmatmul.mubr.msk.f32.gmra.mxu1 %vm609_vm4, %v742_v44  ;;  %v751_v53 = vpop.trf.xlu0 }
 0x23a   : > { %1648 = vmatprep.mubr.msk.f32.mxu1 %vm609_vm4, %v743_v45 }
 0x23d   : > { %1649 = vmatmul.mubr.msk.f32.gmra.mxu1 %vm609_vm4, %v744_v46  ;;  %v752_v54 = vpop.trf.xlu0 }
 0x23e   : > { %1651 = vmatprep.mubr.msk.f32.mxu1 %vm609_vm4, %v745_v47 }
 0x241   : > { %1652 = vmatmul.mubr.msk.f32.gmra.mxu1 %vm609_vm4, %v746_v48  ;;  %v753_v55 = vpop.trf.xlu0 }
 0x242   : > { %1654 = vmatprep.mubr.msk.f32.mxu1 %vm609_vm4, %v747_v49 }
 0x245   : > { %1655 = vmatmul.mubr.msk.f32.gmra.mxu1 %vm609_vm4, %v748_v50  ;;  %v754_v56 = vpop.trf.xlu0 }
 0x246   : > { %1657 = vmatprep.mubr.msk.f32.mxu1 %vm609_vm4, %v749_v51 }
 0x249   : > { %1658 = vmatmul.mubr.msk.f32.gmra.mxu1 %vm609_vm4, %v750_v52 }
 0x24a   : > { %1660 = vmatprep.mubr.msk.f32.mxu1 %vm609_vm4, %v751_v53 }
 0x24d   : > { %1661 = vmatmul.mubr.msk.f32.gmra.mxu1 %vm609_vm4, %v752_v54 }
 0x24e   : > { %1663 = vmatprep.mubr.msk.f32.mxu1 %vm609_vm4, %v753_v55 }
 0x251   : > { %1664 = vmatmul.mubr.msk.f32.gmra.mxu1 %vm609_vm4, %v754_v56 }
 0x2d5   : > { %v2411_v57 = vpop.f32.mrf.mxu1 }
 0x2d7   : > { %v2413_v58 = vpop.f32.mrf.mxu1 }
 0x2d9   : > { %v2415_v59 = vpop.f32.mrf.mxu1 }
 0x2db   : > { %v2417_v60 = vpop.f32.mrf.mxu1 }
 0x2dd   : > { %v2419_v61 = vpop.f32.mrf.mxu1 }
 0x2de   : > { %v1080_v22 = vmax.f32 %v2411_v57, %v2419_v61 }
 0x2df   : > { %v2421_v62 = vpop.f32.mrf.mxu1 }
 0x2e0   : > { %v1079_v20 = vmax.f32 %v2413_v58, %v2421_v62 }
 0x2e1   : > { %v2423_v63 = vpop.f32.mrf.mxu1 }
 0x2e2   : > { %v1082_v23 = vmax.f32 %v2415_v59, %v2423_v63 }
 0x2e3   : > { %v2425_v0 = vpop.f32.mrf.mxu1 }
 0x2e4   : > { %v1081_v24 = vmax.f32 %v2417_v60, %v2425_v0 }
 0x2e5   : > { %v2427_v1 = vpop.f32.mrf.mxu1 }
 0x2e6   : > { %v1084_v27 = vmax.f32 %v1080_v22, %v2427_v1 }
 0x2e7   : > { %v2429_v2 = vpop.f32.mrf.mxu1 }
 0x2e8   : > { %v1083_v25 = vmax.f32 %v1079_v20, %v2429_v2 }
 0x2e9   : > { %v2431_v3 = vpop.f32.mrf.mxu1 }
 0x2ea   : > { %v1086_v28 = vmax.f32 %v1082_v23, %v2431_v3 }
 0x2eb   : > { %v2433_v4 = vpop.f32.mrf.mxu1 }
 0x2ec   : > { %v1085_v29 = vmax.f32 %v1081_v24, %v2433_v4 }
 0x2ed   : > { %v2435_v5 = vpop.f32.mrf.mxu1 }
 0x2ee   : > { %v1088_v32 = vmax.f32 %v1084_v27, %v2435_v5 }
 0x2ef   : > { %v2437_v6 = vpop.f32.mrf.mxu1 }
 0x2f0   : > { %v1087_v30 = vmax.f32 %v1083_v25, %v2437_v6 }
 0x2f1   : > { %v2439_v7 = vpop.f32.mrf.mxu1 }
 0x2f2   : > { %v1090_v33 = vmax.f32 %v1086_v28, %v2439_v7 }
 0x2f3   : > { %v2441_v8 = vpop.f32.mrf.mxu1 }
 0x2f4   : > { %v1089_v34 = vmax.f32 %v1085_v29, %v2441_v8 }
 0x2f5   : > { %v2443_v9 = vpop.f32.mrf.mxu1 }
 0x2f6   : > { %v1092_v37 = vmax.f32 %v1088_v32, %v2443_v9 }
 0x2f7   : > { %v2445_v10 = vpop.f32.mrf.mxu1 }
 0x2f8   : > { %v1091_v35 = vmax.f32 %v1087_v30, %v2445_v10 }
 0x2f9   : > { %v2447_v11 = vpop.f32.mrf.mxu1 }
 0x2fa   : > { %v1094_v38 = vmax.f32 %v1090_v33, %v2447_v11 }
 0x2fb   : > { %v2453_v14 = vpop.f32.mrf.mxu1 }
 0x2fc   : > { %v1093_v39 = vmax.f32 %v1089_v34, %v2453_v14 }
 0x2fd   : > { %v2455_v15 = vpop.f32.mrf.mxu1 }
 0x2fe   : > { %v1096_v42 = vmax.f32 %v1092_v37, %v2455_v15 }
 0x2ff   : > { %v2457_v16 = vpop.f32.mrf.mxu1 }
 0x300   : > { %v1095_v40 = vmax.f32 %v1091_v35, %v2457_v16 }
 0x301   : > { %v2459_v17 = vpop.f32.mrf.mxu1 }
 0x302   : > { %v1098_v43 = vmax.f32 %v1094_v38, %v2459_v17 }
 0x303   : > { %v2461_v18 = vpop.f32.mrf.mxu1 }
 0x304   : > { %v1097_v44 = vmax.f32 %v1093_v39, %v2461_v18 }
 0x305   : > { %v2463_v19 = vpop.f32.mrf.mxu1 }
 0x306   : > { %v1100_v47 = vmax.f32 %v1096_v42, %v2463_v19 }
 0x307   : > { %v2467_v21 = vpop.f32.mrf.mxu1 }
 0x308   : > { %v1099_v45 = vmax.f32 %v1095_v40, %v2467_v21 }
 0x309   : > { %v2476_v26 = vpop.f32.mrf.mxu1 }
 0x30a   : > { %v1102_v48 = vmax.f32 %v1098_v43, %v2476_v26 }
 0x30b   : > { %v2482_v31 = vpop.f32.mrf.mxu1 }
 0x30c   : > { %v1101_v49 = vmax.f32 %v1097_v44, %v2482_v31 }
 0x30d   : > { %v2488_v36 = vpop.f32.mrf.mxu1 }
 0x30e   : > { %v1104_v52 = vmax.f32 %v1100_v47, %v2488_v36 }
 0x30f   : > { %v2494_v41 = vpop.f32.mrf.mxu1 }
 0x310   : > { %v1103_v50 = vmax.f32 %v1099_v45, %v2494_v41 }
 0x311   : > { %v2500_v46 = vpop.f32.mrf.mxu1 }
 0x312   : > { %v1106_v53 = vmax.f32 %v1102_v48, %v2500_v46  ;;  %v1107_v55 = vmax.f32 %v1103_v50, %v1104_v52 }
 0x313   : > { %v2506_v51 = vpop.f32.mrf.mxu1 }
 0x314   : > { %v1105_v54 = vmax.f32 %v1101_v49, %v2506_v51 }
 0x316   : > { %v1108_v56 = vmax.f32 %v1105_v54, %v1106_v53 }
 0x318   : > { %v1109_v13 = vmax.f32 %v1107_v55, %v1108_v56 }
 0x31a   : > { %v1110_v20 = vrot.slane %v1109_v13, 4 }
 0x31c   : > { %v1111_v22 = vmax.f32 %v1109_v13, %v1110_v20 }
 0x31e   : > { %v1112_v23 = vrot.slane %v1111_v22, 2 }
 0x320   : > { %v1113_v24 = vmax.f32 %v1111_v22, %v1112_v23 }
 0x322   : > { %v1114_v25 = vrot.slane %v1113_v24, 1 }
 0x324   : > { %v2511_v27 = vmax.f32 %v1113_v24, %v1114_v25 }
 0x326   : > { %v1116_v28 = vsub.f32 %v2413_v58, %v2511_v27  ;;  %v1117_v29 = vsub.f32 %v2411_v57, %v2511_v27  ;;  %v1118_v30 = vsub.f32 %v2417_v60, %v2511_v27  ;;  %v1119_v32 = vsub.f32 %v2415_v59, %v2511_v27 }
 0x327   : > { %v1120_v35 = vsub.f32 %v2421_v62, %v2511_v27  ;;  %v1121_v38 = vsub.f32 %v2419_v61, %v2511_v27  ;;  %v1122_v57 = vsub.f32 %v2425_v0, %v2511_v27  ;;  %v1123_v59 = vsub.f32 %v2423_v63, %v2511_v27 }
 0x328   : > { %v1148_v33 = vmul.f32 1.442695, %v1116_v28  ;;  %v1150_v34 = vmul.f32 1.442695, %v1117_v29  ;;  %v1152_v37 = vmul.f32 1.442695, %v1118_v30  ;;  %v1124_v62 = vsub.f32 %v2429_v2, %v2511_v27 }
 0x329   : > { %v1154_v58 = vmul.f32 1.442695, %v1119_v32  ;;  %v1156_v60 = vmul.f32 1.442695, %v1120_v35  ;;  %v1158_v39 = vmul.f32 1.442695, %v1121_v38  ;;  %v1125_v61 = vsub.f32 %v2427_v1, %v2511_v27 }
 0x32a   : > { %1801 = vpow2.f32 %v1148_v33  ;;  %v1160_v40 = vmul.f32 1.442695, %v1122_v57  ;;  %v1162_v42 = vmul.f32 1.442695, %v1123_v59  ;;  %v1126_v0 = vsub.f32 %v2433_v4, %v2511_v27 }
 0x32b   : > { %1803 = vpow2.f32 %v1150_v34  ;;  %v1164_v43 = vmul.f32 1.442695, %v1124_v62  ;;  %v1127_v63 = vsub.f32 %v2431_v3, %v2511_v27  ;;  %v1166_v45 = vmul.f32 1.442695, %v1125_v61 }
 0x32c   : > { %1805 = vpow2.f32 %v1152_v37  ;;  %v1128_v47 = vsub.f32 %v2437_v6, %v2511_v27  ;;  %v1168_v1 = vmul.f32 1.442695, %v1126_v0  ;;  %v1129_v49 = vsub.f32 %v2435_v5, %v2511_v27 }
 0x32d   : > { %1807 = vpow2.f32 %v1154_v58  ;;  %v1170_v50 = vmul.f32 1.442695, %v1127_v63  ;;  %v1130_v53 = vsub.f32 %v2441_v8, %v2511_v27  ;;  %v1131_v56 = vsub.f32 %v2439_v7, %v2511_v27 }
 0x32e   : > { %1809 = vpow2.f32 %v1156_v60  ;;  %v1172_v6 = vmul.f32 1.442695, %v1128_v47  ;;  %v1174_v5 = vmul.f32 1.442695, %v1129_v49  ;;  %v1132_v22 = vsub.f32 %v2445_v10, %v2511_v27 }
 0x32f   : > { %1811 = vpow2.f32 %v1158_v39  ;;  %v1147_v8 = vsub.f32 %v2500_v46, %v2511_v27  ;;  %v1176_v23 = vmul.f32 1.442695, %v1130_v53  ;;  %v1133_v7 = vsub.f32 %v2443_v9, %v2511_v27 }
 0x330   : > { %1813 = vpow2.f32 %v1160_v40  ;;  %v1146_v28 = vsub.f32 %v2506_v51, %v2511_v27  ;;  %v1178_v29 = vmul.f32 1.442695, %v1131_v56  ;;  %v1134_v46 = vsub.f32 %v2453_v14, %v2511_v27 }
 0x331   : > { %1815 = vpow2.f32 %v1162_v42  ;;  %v1180_v32 = vmul.f32 1.442695, %v1132_v22  ;;  %v1145_v33 = vsub.f32 %v2488_v36, %v2511_v27  ;;  %v1210_v34 = vmul.f32 1.442695, %v1147_v8 }
 0x332   : > { %1817 = vpow2.f32 %v1164_v43  ;;  %v1135_v51 = vsub.f32 %v2447_v11, %v2511_v27  ;;  %v1182_v37 = vmul.f32 1.442695, %v1133_v7  ;;  %v1144_v38 = vsub.f32 %v2494_v41, %v2511_v27 }
 0x333   : > { %1819 = vpow2.f32 %v1166_v45  ;;  %v1208_v58 = vmul.f32 1.442695, %v1146_v28  ;;  %v1136_v36 = vsub.f32 %v2457_v16, %v2511_v27  ;;  %v1184_v60 = vmul.f32 1.442695, %v1134_v46 }
 0x334   : > { %1821 = vpow2.f32 %v1168_v1  ;;  %v1143_v59 = vsub.f32 %v2476_v26, %v2511_v27  ;;  %v1206_v39 = vmul.f32 1.442695, %v1145_v33  ;;  %v1137_v41 = vsub.f32 %v2455_v15, %v2511_v27 }
 0x335   : > { %1823 = vpow2.f32 %v1170_v50  ;;  %v1186_v40 = vmul.f32 1.442695, %v1135_v51  ;;  %v1142_v61 = vsub.f32 %v2482_v31, %v2511_v27  ;;  %v1204_v16 = vmul.f32 1.442695, %v1144_v38 }
 0x336   : > { %1825 = vpow2.f32 %v1172_v6  ;;  %v1138_v26 = vsub.f32 %v2461_v18, %v2511_v27  ;;  %v1188_v43 = vmul.f32 1.442695, %v1136_v36  ;;  %v1141_v63 = vsub.f32 %v2463_v19, %v2511_v27 }
 0x337   : > { %v2535_v44 = vpop.eup %1801  ;;  %1827 = vpow2.f32 %v1174_v5  ;;  %v1202_v45 = vmul.f32 1.442695, %v1143_v59  ;;  %v1139_v31 = vsub.f32 %v2459_v17, %v2511_v27  ;;  %v1190_v1 = vmul.f32 1.442695, %v1137_v41 }
 0x338   : > { %v2539_v2 = vpop.eup %1803  ;;  %1829 = vpow2.f32 %v1176_v23  ;;  %v1200_v49 = vmul.f32 1.442695, %v1142_v61  ;;  %v1198_v53 = vmul.f32 1.442695, %v1141_v63 }
 0x339   : > { %v1212_v48 = vadd.f32 %v2539_v2, %v2535_v44  ;;  %v2545_v4 = vpop.eup %1805  ;;  %1831 = vpow2.f32 %v1178_v29 }
 0x33a   : > { %v2550_v52 = vpop.eup %1807  ;;  %1833 = vpow2.f32 %v1180_v32 }
 0x33b   : > { %v1213_v3 = vadd.f32 %v2545_v4, %v1212_v48  ;;  %v2555_v55 = vpop.eup %1809  ;;  %1835 = vpow2.f32 %v1210_v34  ;;  %v1140_v48 = vsub.f32 %v2467_v21, %v2511_v27 }
 0x33c   : > { %v2560_v20 = vpop.eup %1811  ;;  %1837 = vpow2.f32 %v1182_v37 }
 0x33d   : > { %v1214_v54 = vadd.f32 %v2550_v52, %v1213_v3  ;;  %v2567_v25 = vpop.eup %1813  ;;  %1839 = vpow2.f32 %v1208_v58  ;;  %v1192_v3 = vmul.f32 1.442695, %v1138_v26  ;;  %v1196_v56 = vmul.f32 1.442695, %v1140_v48 }
 0x33e   : > { %v2574_v10 = vpop.eup %1815  ;;  %1841 = vpow2.f32 %v1184_v60 }
 0x33f   : > { %v1215_v13 = vadd.f32 %v2555_v55, %v1214_v54  ;;  %v2581_v35 = vpop.eup %1817  ;;  %1843 = vpow2.f32 %v1206_v39  ;;  %v1194_v54 = vmul.f32 1.442695, %v1139_v31 }
 0x340   : > { %v2588_v57 = vpop.eup %1819  ;;  %1845 = vpow2.f32 %v1186_v40 }
 0x341   : > { %v1216_v24 = vadd.f32 %v2560_v20, %v1215_v13  ;;  %v2595_v62 = vpop.eup %1821  ;;  %1847 = vpow2.f32 %v1204_v16 }
 0x342   : > { %v1824_v0 = vpop.eup %1823  ;;  %1849 = vpow2.f32 %v1188_v43 }
 0x343   : > { %v1217_v30 = vadd.f32 %v2567_v25, %v1216_v24  ;;  %v1826_v47 = vpop.eup %1825  ;;  %1851 = vpow2.f32 %v1202_v45 }
 0x344   : > { %v1828_v50 = vpop.eup %1827  ;;  %1853 = vpow2.f32 %v1190_v1 }
 0x345   : > { %v1218_v9 = vadd.f32 %v2574_v10, %v1217_v30  ;;  %v1830_v6 = vpop.eup %1829  ;;  %1855 = vpow2.f32 %v1200_v49 }
 0x346   : > { %v1832_v5 = vpop.eup %1831  ;;  %1857 = vpow2.f32 %v1192_v3 }
 0x347   : > { %v1219_v14 = vadd.f32 %v2581_v35, %v1218_v9  ;;  %v2610_v13 = vpop.eup %1833  ;;  %1859 = vpow2.f32 %v1198_v53 }
 0x348   : > { %v1836_v27 = vpop.eup %1835  ;;  %1861 = vpow2.f32 %v1194_v54 }
 0x349   : > { %v1220_v11 = vadd.f32 %v2588_v57, %v1219_v14  ;;  %v1838_v22 = vpop.eup %1837  ;;  %1863 = vpow2.f32 %v1196_v56  ;;  %1576 = vmatprep.subr.mxu0 %v1836_v27 }
 0x34a   : > { %v1840_v23 = vpop.eup %1839  ;;  %1577 = vmatpush3.msra.mxu0 %v1832_v5 }
 0x34b   : > { %v1221_v42 = vadd.f32 %v2595_v62, %v1220_v11  ;;  %v1842_v24 = vpop.eup %1841  ;;  %1578 = vmatprep.subr.mxu0 %v1840_v23 }
 0x34c   : > { %v1844_v28 = vpop.eup %1843  ;;  %1579 = vmatpush3.msra.mxu0 %v1830_v6 }
 0x34d   : > { %v1222_v15 = vadd.f32 %v1824_v0, %v1221_v42  ;;  %v1846_v29 = vpop.eup %1845  ;;  %1580 = vmatprep.subr.mxu0 %v1844_v28 }
 0x34e   : > { %v1848_v46 = vpop.eup %1847  ;;  %1581 = vmatpush3.msra.mxu0 %v1828_v50 }
 0x34f   : > { %v1223_v18 = vadd.f32 %v1826_v47, %v1222_v15  ;;  %v1850_v32 = vpop.eup %1849  ;;  %1582 = vmatprep.subr.mxu0 %v1848_v46 }
 0x350   : > { %v1852_v34 = vpop.eup %1851  ;;  %1583 = vmatpush3.msra.mxu0 %v1826_v47 }
 0x351   : > { %v1224_v19 = vadd.f32 %v1828_v50, %v1223_v18  ;;  %v1854_v9 = vpop.eup %1853  ;;  %1584 = vmatprep.subr.mxu0 %v1852_v34 }
 0x352   : > { %v1856_v37 = vpop.eup %1855  ;;  %1585 = vmatpush3.msra.mxu0 %v1824_v0 }
 0x353   : > { %v1225_v17 = vadd.f32 %v1830_v6, %v1224_v19  ;;  %v1858_v38 = vpop.eup %1857  ;;  %1586 = vmatprep.subr.mxu0 %v1856_v37 }
 0x354   : > { %v1860_v14 = vpop.eup %1859  ;;  %1587 = vmatpush3.msra.mxu0 %v2595_v62 }
 0x355   : > { %v1226_v21 = vadd.f32 %v1832_v5, %v1225_v17  ;;  %v1862_v36 = vpop.eup %1861  ;;  %1588 = vmatprep.subr.mxu0 %v1860_v14 }
 0x356   : > { %v1864_v59 = vpop.eup %1863  ;;  %1589 = vmatpush3.msra.mxu0 %v2588_v57 }
 0x357   : > { %v1227_v8 = vadd.f32 %v2610_v13, %v1226_v21  ;;  %1590 = vmatprep.subr.mxu0 %v1864_v59 }
 0x358   : > { %1591 = vmatpush3.msra.mxu0 %v2581_v35 }
 0x359   : > { %v1228_v7 = vadd.f32 %v1838_v22, %v1227_v8  ;;  %1592 = vmatprep.subr.mxu0 %v1862_v36 }
 0x35a   : > { %1593 = vmatpush3.msra.mxu0 %v2574_v10 }
 0x35b   : > { %v1229_v30 = vadd.f32 %v1842_v24, %v1228_v7  ;;  %1594 = vmatprep.subr.mxu0 %v1858_v38 }
 0x35c   : > { %1595 = vmatpush3.msra.mxu0 %v2567_v25 }
 0x35d   : > { %v1230_v33 = vadd.f32 %v1846_v29, %v1229_v30  ;;  %1596 = vmatprep.subr.mxu0 %v1854_v9 }
 0x35e   : > { %1597 = vmatpush3.msra.mxu0 %v2560_v20 }
 0x35f   : > { %v1231_v51 = vadd.f32 %v1850_v32, %v1230_v33  ;;  %1598 = vmatprep.subr.mxu0 %v1850_v32 }
 0x360   : > { %1599 = vmatpush3.msra.mxu0 %v2555_v55 }
 0x361   : > { %v1232_v58 = vadd.f32 %v1854_v9, %v1231_v51  ;;  %1600 = vmatprep.subr.mxu0 %v1846_v29 }
 0x362   : > { %1601 = vmatpush3.msra.mxu0 %v2550_v52 }
 0x363   : > { %v1233_v60 = vadd.f32 %v1858_v38, %v1232_v58  ;;  %1602 = vmatprep.subr.mxu0 %v1842_v24 }
 0x364   : > { %1603 = vmatpush3.msra.mxu0 %v2545_v4 }
 0x365   : > { %v1234_v39 = vadd.f32 %v1862_v36, %v1233_v60  ;;  %1604 = vmatprep.subr.mxu0 %v1838_v22 }
 0x366   : > { %1605 = vmatpush3.msra.mxu0 %v2539_v2 }
 0x367   : > { %v1235_v11 = vadd.f32 %v1864_v59, %v1234_v39  ;;  %1606 = vmatprep.subr.mxu0 %v2610_v13 }
 0x368   : > { %1607 = vmatpush3.msra.mxu0 %v2535_v44 }
 0x369   : > { %v1236_v41 = vadd.f32 %v1860_v14, %v1235_v11  ;;  %1318 = vmatmul.mubr.f32.vlgmr.msra.gmra.mxu0 %v2449_v12 }
 0x36b   : > { %v1237_v40 = vadd.f32 %v1856_v37, %v1236_v41 }
 0x36d   : > { %v1238_v62 = vadd.f32 %v1852_v34, %v1237_v40 }
 0x36f   : > { %v1239_v57 = vadd.f32 %v1848_v46, %v1238_v62 }
 0x371   : > { %v1240_v35 = vadd.f32 %v1844_v28, %v1239_v57 }
 0x373   : > { %v1241_v10 = vadd.f32 %v1840_v23, %v1240_v35 }
 0x375   : > { %v1242_v25 = vadd.f32 %v1836_v27, %v1241_v10 }
 0x377   : > { %v1243_v55 = vrot.slane %v1242_v25, 4 }
 0x379   : > { %v1244_v52 = vadd.f32 %v1243_v55, %v1242_v25 }
 0x37b   : > { %v1245_v20 = vrot.slane %v1244_v52, 2 }
 0x37d   : > { %v1246_v61 = vadd.f32 %v1245_v20, %v1244_v52 }
 0x37f   : > { %v1247_v4 = vrot.slane %v1246_v61, 1 }
 0x381   : > { %v1248_v16 = vadd.f32 %v1247_v4, %v1246_v61 }
 0x383   : > { %1865 = vrcp.f32 %v1248_v16 }
 0x390   : > { %v1866_v0 = vpop.eup %1865 }
 0x429   : > { %v1608_v2 = vpop.f32.mrf.mxu0 }
 0x42b   : > { %v1609_v42 = vpop.f32.mrf.mxu0 }
 0x42c   : > { %v1610_v44 = vadd.f32 %v1609_v42, %v1608_v2 }
 0x42e   : > { %v1324_v12 = vmul.f32 %v1866_v0, %v1610_v44 }
 0x430   : > { %1325 = vst [vmem:[%s344_s11] sm:$0xf] %v1324_v12 }
 0x431   : > { %1988 = shalt.err (!%p1985_p2)
}
 0x432   : > { %s1989_s28 = scalar_lea.hbm %s1340_s2, 64  ;;  %s1993_s11 = scalar_lea.hbm %s2733_s17, 256 }
 0x433   : > { %p1990_p8 = scmp.ne.s32.totalorder %s1340_s2, %s1989_s28  ;;  %p1994_p1 = scmp.lt.s32.totalorder %s1340_s2, %s2733_s17 }
 0x434   : > { %p1995_p3 = scmp.lt.s32.totalorder %s1993_s11, %s1989_s28 }
 0x435   : > { %p1991_p6 = pnand %p1990_p8, %p2734_p11 }
 0x436   : > { %p1996_p7 = por %p1995_p3, %p1994_p1 }
 0x437   : > { %p1992_p4 = pneg %p1991_p6 }
 0x439   : > { %p1997_p9 = pnand %p1996_p7, %p1992_p4 }
 0x43b   : > { %2000 = shalt.err (!%p1997_p9)
}
 0x43c   : > { %1678 = dma.vmem_to_hbm [thread:$0]  (%p2734_p11), %s1343_s14, 64, %s1340_s2, %s1327_s10  }
 0x43d PF: > { %s2735_s3 = sld [smem:[#allocation18_spill]]  ;;  %p1703_p13 = scmp.ge.s32.totalorder %s2107_s7, 2 }
 0x43e   : > { %s2736_s4 = sld [smem:[#allocation22_spill]] }
 0x443   : > { %s1354_s8 = sand.u32 1, %s2735_s3  }
 0x444   : > { %p2737_p0 = scmp.ne.s32.totalorder %s2736_s4, 0  ;;  %s1355_s18 = scalar_lea.sflag [#allocation6], %s1354_s8 }
 0x446   : > { %p1695_p5 = pnand %p1703_p13, %p2737_p0 }
 0x448   : > { %p1696_p10 = pneg %p1695_p5 }
 0x44a   : > { %2062 = dma.done.wait (%p1696_p10), %s1355_s18, 64  }
 0x44b   : > { %2064 = vsyncadd (%p1696_p10), %s1355_s18, 4294967232  ;;  %s26_s7 = sadd.s32 1, %s2107_s7   ;;  %s2738_s27 = sld [smem:[#allocation20_spill]] }
 0x44c   : > { %p23_p12 = scmp.ge.s32.totalorder %s26_s7, 6   ;;  %s2739_s20 = sld [smem:[#allocation23_spill]] }
 0x44d   : > { %s2740_s14 = smov %s2755_s24  ;;  %s2741_s21 = smov %s2071_s22 }
 0x44e   : > { %s2742_s22 = smov %s2075_s23  ;;  %s2743_s23 = smov %s2296_s6 }
 0x44f   : > { %s2744_s24 = smov %s2083_s25  ;;  %s2745_s25 = smov %s2087_s26 }
 0x450   : > { %s2746_s26 = smov %s2291_s29  ;;  %s2747_s28 = smov %s2103_s30 }
 0x451   : > { %s2749_s30 = smov %s2740_s14  ;;  %25 = sbr.rel (!%p23_p12) target bundleno = 17 (0x11), region = 115 }
 0x452   : > { %s2748_s29 = smov %s2739_s20 }
 0x456   :  { %1360 = vsyncpa [#allocation5], 1 }
 0x457   :  { %1362 = vsyncpa [#allocation5 + $0x1], 1 }
 0x458   :  { %1363 = vsyncpa [#allocation8], 1 }
 0x459   :  { %1365 = vsyncpa [#allocation8 + $0x1], 1 }
 0x45a   :  { %1366 = vsyncpa [#allocation11], 1 }
 0x45b   :  { %1367 = vsyncpa [#allocation6], 1 }
 0x45c   :  { %1369 = vsyncpa [#allocation6 + $0x1], 1 }

</bundles_post_ra>
